<compile_context>
chip_gen: v6e
topology: v6e:2x2x1
jax: 0.10.0
libtpu: 0.0.40
codegen_flags: <defaults>
</compile_context>

<pallas_src>
import functools
import math

import numpy as np
import jax
import jax.numpy as jnp
from jax.experimental import pallas as pl
from jax.experimental.pallas import tpu as pltpu


_VMEM_LIMIT = 48 * 1024 * 1024   # safe on v5e/v6e (128 MiB phys) and v7x (64 MiB phys)
_K_FULL_MAX = 3072               # K below this -> single full-K block (no reduction grid)


# ----------------------------------------------------------------------------
# tiling helpers
# ----------------------------------------------------------------------------
def _round_up(x, m):
    return (x + m - 1) // m * m


def _padded_k(k):
    return _round_up(k, 8) if k <= _K_FULL_MAX else _round_up(k, 128)


def _tk_for(kp):
    if kp <= _K_FULL_MAX:
        return kp
    for cand in range(2048, 127, -128):
        if kp % cand == 0:
            return cand
    return 128


def _pick_tn(n):
    if n % 128 != 0:
        return n                       # non-128-aligned widths in this net are small (320/960/4)
    if n % 256 == 0 and n >= 512:
        return 256
    return 128


def _pick_tm(m):
    mp = _round_up(m, 8)
    tm = min(256, mp)
    if mp % tm:
        mp = _round_up(mp, tm)
    return tm, mp


def _pick_conv_tk(cin):
    if cin <= 1280:
        return cin
    for cand in (1280, 1024, 896, 768, 640, 512, 384, 256, 128):
        if cin % cand == 0:
            return cand
    return cin


# ----------------------------------------------------------------------------
# Pallas kernel 1: tiled matmul, bf16 x bf16 -> f32 acc, fused bias (+ optional SiLU)
# ----------------------------------------------------------------------------
def _matmul_kernel(a_ref, b_ref, bias_ref, o_ref, acc_ref, *, act):
    @pl.when(pl.program_id(2) == 0)
    def _():
        acc_ref[...] = jnp.zeros_like(acc_ref)

    acc_ref[...] += jnp.dot(a_ref[...], b_ref[...],
                            preferred_element_type=jnp.float32)

    @pl.when(pl.program_id(2) == pl.num_programs(2) - 1)
    def _():
        r = acc_ref[...] + bias_ref[...]
        if act == "silu":
            r = r * jax.nn.sigmoid(r)
        o_ref[...] = r.astype(o_ref.dtype)


@functools.partial(jax.jit, static_argnames=("act",))
def pallas_matmul(a, b, bias=None, act="none"):
    """out = act(a @ b + bias); a:(M,K), b:(Kp,N) bf16 (pre-padded), bias:(1,N) f32 or None."""
    M, K = a.shape
    Kp, N = b.shape
    a = a.astype(jnp.bfloat16)
    kp_want = _padded_k(K)
    if Kp < kp_want:                    # defensive; weights are pre-padded at build time
        b = jnp.pad(b, ((0, kp_want - Kp), (0, 0)))
        Kp = kp_want
    tm, Mp = _pick_tm(M)
    tk = _tk_for(Kp)
    tn = _pick_tn(N)
    if Mp > M or Kp > K:
        a = jnp.pad(a, ((0, Mp - M), (0, Kp - K)))
    if bias is None:
        bias = jnp.zeros((1, N), jnp.float32)
    else:
        bias = bias.reshape(1, N).astype(jnp.float32)
    grid = (Mp // tm, N // tn, Kp // tk)
    out = pl.pallas_call(
        functools.partial(_matmul_kernel, act=act),
        out_shape=jax.ShapeDtypeStruct((Mp, N), jnp.bfloat16),
        grid_spec=pltpu.PrefetchScalarGridSpec(
            num_scalar_prefetch=0,
            grid=grid,
            in_specs=[pl.BlockSpec((tm, tk), lambda i, j, k: (i, k)),
                      pl.BlockSpec((tk, tn), lambda i, j, k: (k, j)),
                      pl.BlockSpec((1, tn), lambda i, j, k: (0, j))],
            out_specs=pl.BlockSpec((tm, tn), lambda i, j, k: (i, j)),
            scratch_shapes=[pltpu.VMEM((tm, tn), jnp.float32)],
        ),
        compiler_params=pltpu.CompilerParams(
            dimension_semantics=("parallel", "parallel", "arbitrary"),
            vmem_limit_bytes=_VMEM_LIMIT),
    )(a, b, bias)
    return out[:M] if Mp > M else out


# ----------------------------------------------------------------------------
# Pallas kernel 2: fused GEGLU matmul  out = (a@Wx+bx) * gelu(a@Wg+bg)
# (avoids materializing the 8C-wide geglu intermediate)
# ----------------------------------------------------------------------------
def _geglu_matmul_kernel(a_ref, wx_ref, wg_ref, bx_ref, bg_ref, o_ref,
                         accx_ref, accg_ref):
    @pl.when(pl.program_id(2) == 0)
    def _():
        accx_ref[...] = jnp.zeros_like(accx_ref)
        accg_ref[...] = jnp.zeros_like(accg_ref)

    a = a_ref[...]
    accx_ref[...] += jnp.dot(a, wx_ref[...], preferred_element_type=jnp.float32)
    accg_ref[...] += jnp.dot(a, wg_ref[...], preferred_element_type=jnp.float32)

    @pl.when(pl.program_id(2) == pl.num_programs(2) - 1)
    def _():
        xh = accx_ref[...] + bx_ref[...]
        gt = accg_ref[...] + bg_ref[...]
        # TODO(synk): torch F.gelu default is exact erf; tanh approximation used for Mosaic lowering.
        o_ref[...] = (xh * jax.nn.gelu(gt, approximate=True)).astype(o_ref.dtype)


@jax.jit
def pallas_geglu_matmul(a, wx, wg, bx, bg):
    M, K = a.shape
    Kp, N = wx.shape
    a = a.astype(jnp.bfloat16)
    tm, Mp = _pick_tm(M)
    tk = _tk_for(Kp)
    tn = _pick_tn(N)
    if Mp > M or Kp > K:
        a = jnp.pad(a, ((0, Mp - M), (0, Kp - K)))
    grid = (Mp // tm, N // tn, Kp // tk)
    out = pl.pallas_call(
        _geglu_matmul_kernel,
        out_shape=jax.ShapeDtypeStruct((Mp, N), jnp.bfloat16),
        grid_spec=pltpu.PrefetchScalarGridSpec(
            num_scalar_prefetch=0,
            grid=grid,
            in_specs=[pl.BlockSpec((tm, tk), lambda i, j, k: (i, k)),
                      pl.BlockSpec((tk, tn), lambda i, j, k: (k, j)),
                      pl.BlockSpec((tk, tn), lambda i, j, k: (k, j)),
                      pl.BlockSpec((1, tn), lambda i, j, k: (0, j)),
                      pl.BlockSpec((1, tn), lambda i, j, k: (0, j))],
            out_specs=pl.BlockSpec((tm, tn), lambda i, j, k: (i, j)),
            scratch_shapes=[pltpu.VMEM((tm, tn), jnp.float32),
                            pltpu.VMEM((tm, tn), jnp.float32)],
        ),
        compiler_params=pltpu.CompilerParams(
            dimension_semantics=("parallel", "parallel", "arbitrary"),
            vmem_limit_bytes=_VMEM_LIMIT),
    )(a, wx, wg, bx.astype(jnp.float32), bg.astype(jnp.float32))
    return out[:M] if Mp > M else out


# ----------------------------------------------------------------------------
# Pallas kernel 3: direct 3x3 stride-1 pad-1 conv.
# The spatially padded activation is flattened to (B, Hp*Wp, Cin); for every tap (kh,kw)
# the needed rows are a uniformly shifted window (offset kh*Wp+kw), so the 9 taps become
# 9 shifted dots accumulated inside the reduction grid -- no im2col HBM buffer.
# Output is produced at padded width (H, Wp) and the 2 garbage columns are sliced off.
# ----------------------------------------------------------------------------
def _conv3x3_kernel(x_ref, w_ref, b_ref, o_ref, acc_ref, *, taps):
    @pl.when(pl.program_id(2) == 0)
    def _():
        acc_ref[...] = jnp.zeros_like(acc_ref)

    mo = acc_ref.shape[0]
    for t in range(9):
        a = x_ref[0, taps[t]:taps[t] + mo, :]
        acc_ref[...] += jnp.dot(a, w_ref[t], preferred_element_type=jnp.float32)

    @pl.when(pl.program_id(2) == pl.num_programs(2) - 1)
    def _():
        o_ref[0] = (acc_ref[...] + b_ref[...]).astype(o_ref.dtype)


@jax.jit
def conv3x3_s1(x, w, b):
    """x: (B,H,W,Cin) bf16, w: (9,Cin,Cout) bf16, b: (1,Cout) f32.  stride 1, pad 1."""
    B, H, W, Cin = x.shape
    Cout = w.shape[-1]
    Wp = W + 2
    xp = jnp.pad(x.astype(jnp.bfloat16), ((0, 0), (1, 1), (1, 1), (0, 0)))
    flat = xp.reshape(B, (H + 2) * Wp, Cin)
    RP = _round_up((H + 2) * Wp + 2, 8)
    if RP > (H + 2) * Wp:
        flat = jnp.pad(flat, ((0, 0), (0, RP - (H + 2) * Wp), (0, 0)))
    MO = H * Wp
    taps = tuple(kh * Wp + kw for kh in range(3) for kw in range(3))
    tkc = _pick_conv_tk(Cin)
    tn = _pick_tn(Cout)
    grid = (B, Cout // tn, Cin // tkc)
    out = pl.pallas_call(
        functools.partial(_conv3x3_kernel, taps=taps),
        out_shape=jax.ShapeDtypeStruct((B, MO, Cout), jnp.bfloat16),
        grid_spec=pltpu.PrefetchScalarGridSpec(
            num_scalar_prefetch=0,
            grid=grid,
            in_specs=[pl.BlockSpec((1, RP, tkc), lambda bb, j, k: (bb, 0, k)),
                      pl.BlockSpec((9, tkc, tn), lambda bb, j, k: (0, k, j)),
                      pl.BlockSpec((1, tn), lambda bb, j, k: (0, j))],
            out_specs=pl.BlockSpec((1, MO, tn), lambda bb, j, k: (bb, 0, j)),
            scratch_shapes=[pltpu.VMEM((MO, tn), jnp.float32)],
        ),
        compiler_params=pltpu.CompilerParams(
            dimension_semantics=("parallel", "parallel", "arbitrary"),
            vmem_limit_bytes=_VMEM_LIMIT),
    )(flat, w, b.astype(jnp.float32))
    return out.reshape(B, H, Wp, Cout)[:, :, :W, :]


# ----------------------------------------------------------------------------
# stride-2 3x3 downsample convs (3 tiny ops): im2col + matmul.
# TODO(synk): fold the strided taps into the conv kernel's index math as well.
# ----------------------------------------------------------------------------
def _im2col(x, k, stride, pad):
    B, H, W, C = x.shape
    xp = jnp.pad(x, ((0, 0), (pad, pad), (pad, pad), (0, 0)))
    Ho = (H + 2 * pad - k) // stride + 1
    Wo = (W + 2 * pad - k) // stride + 1
    patches = []
    for i in range(k):
        for j in range(k):
            patches.append(xp[:, i:i + stride * Ho:stride, j:j + stride * Wo:stride, :])
    cols = jnp.concatenate(patches, axis=-1)           # (B, Ho, Wo, 9*C)  order (kh, kw, cin)
    return cols.reshape(B * Ho * Wo, k * k * C), Ho, Wo


@jax.jit
def conv3x3_down(x, w, b):
    B = x.shape[0]
    cols, Ho, Wo = _im2col(x.astype(jnp.bfloat16), 3, 2, 1)
    y = pallas_matmul(cols, w, b)
    return y.reshape(B, Ho, Wo, -1)


# ----------------------------------------------------------------------------
# Pallas kernel 4: GroupNorm(32) with fused affine + optional SiLU.
# Group statistics via tiny dots against a constant (C,G) grouping matrix -> no reshapes,
# no activation-sized gamma/beta broadcasts.
# ----------------------------------------------------------------------------
def _groupnorm_kernel(x_ref, g_ref, b_ref, m_ref, mt_ref, o_ref, *, eps, apply_silu, inv_n):
    x = x_ref[0].astype(jnp.float32)                       # (HW, C)
    s1 = jnp.sum(x, axis=0, keepdims=True)                 # (1, C)
    s2 = jnp.sum(x * x, axis=0, keepdims=True)
    mean_g = jnp.dot(s1, m_ref[...], preferred_element_type=jnp.float32) * inv_n   # (1, G)
    ex2_g = jnp.dot(s2, m_ref[...], preferred_element_type=jnp.float32) * inv_n
    var_g = ex2_g - mean_g * mean_g
    inv_g = jax.lax.rsqrt(var_g + eps)
    mean_c = jnp.dot(mean_g, mt_ref[...], preferred_element_type=jnp.float32)       # (1, C)
    inv_c = jnp.dot(inv_g, mt_ref[...], preferred_element_type=jnp.float32)
    scale = inv_c * g_ref[...]
    shift = b_ref[...] - mean_c * scale
    y = x * scale + shift
    if apply_silu:
        y = y * jax.nn.sigmoid(y)
    o_ref[0] = y.astype(o_ref.dtype)


@functools.partial(jax.jit, static_argnames=("apply_silu",))
def group_norm(x, p, apply_silu=False):
    B, H, W, C = x.shape
    HW = H * W
    xf = x.reshape(B, HW, C)
    inv_n = 1.0 / float(HW * (C // 32))
    out = pl.pallas_call(
        functools.partial(_groupnorm_kernel, eps=1e-5, apply_silu=apply_silu, inv_n=inv_n),
        out_shape=jax.ShapeDtypeStruct((B, HW, C), jnp.bfloat16),
        grid=(B,),
        in_specs=[pl.BlockSpec((1, HW, C), lambda b: (b, 0, 0)),
                  pl.BlockSpec((1, C), lambda b: (0, 0)),
                  pl.BlockSpec((1, C), lambda b: (0, 0)),
                  pl.BlockSpec((C, 32), lambda b: (0, 0)),
                  pl.BlockSpec((32, C), lambda b: (0, 0))],
        out_specs=pl.BlockSpec((1, HW, C), lambda b: (b, 0, 0)),
        compiler_params=pltpu.CompilerParams(dimension_semantics=("parallel",)),
    )(xf, p["g"], p["b"], p["m"], p["mt"])
    return out.reshape(B, H, W, C)


# ----------------------------------------------------------------------------
# Pallas kernel 5: LayerNorm with (1,C) params
# ----------------------------------------------------------------------------
def _layernorm_kernel(x_ref, g_ref, b_ref, o_ref, *, eps):
    x = x_ref[...].astype(jnp.float32)
    mean = jnp.mean(x, axis=1, keepdims=True)
    var = jnp.mean(x * x, axis=1, keepdims=True) - mean * mean
    inv = jax.lax.rsqrt(var + eps)
    y = (x - mean) * inv * g_ref[...] + b_ref[...]
    o_ref[...] = y.astype(o_ref.dtype)


@jax.jit
def layer_norm(x, p):
    B, L, C = x.shape
    R = B * L
    x2 = x.reshape(R, C)
    tr = R if R <= 256 else 256
    assert R % tr == 0, (R, tr)
    out = pl.pallas_call(
        functools.partial(_layernorm_kernel, eps=1e-5),
        out_shape=jax.ShapeDtypeStruct((R, C), jnp.bfloat16),
        grid=(R // tr,),
        in_specs=[pl.BlockSpec((tr, C), lambda i: (i, 0)),
                  pl.BlockSpec((1, C), lambda i: (0, 0)),
                  pl.BlockSpec((1, C), lambda i: (0, 0))],
        out_specs=pl.BlockSpec((tr, C), lambda i: (i, 0)),
        compiler_params=pltpu.CompilerParams(dimension_semantics=("parallel",)),
    )(x2, p["g"], p["b"])
    return out.reshape(B, L, C)


# ----------------------------------------------------------------------------
# Pallas kernel 6: attention, all heads per grid step (grid over batch only).
# 1/sqrt(dh) is folded into the q-projection weights at build time.
# ----------------------------------------------------------------------------
def _attention_kernel(q_ref, k_ref, v_ref, o_ref):
    q = q_ref[0]                                            # (H, Lq, dh) bf16
    k = k_ref[0]
    v = v_ref[0]
    s = jnp.einsum('hqd,hkd->hqk', q, k, preferred_element_type=jnp.float32)
    m = jnp.max(s, axis=-1, keepdims=True)
    p = jnp.exp(s - m)
    l = jnp.sum(p, axis=-1, keepdims=True)
    o = jnp.einsum('hqk,hkd->hqd', p.astype(v.dtype), v,
                   preferred_element_type=jnp.float32)
    o_ref[0] = (o * pl.reciprocal(l, approx=True)).astype(o_ref.dtype)


@jax.jit
def pallas_attention(q, k, v):
    """q: (B, nh, Lq, dh), k/v: (B, nh, Lk, dh), all bf16."""
    B, nh, Lq, dh = q.shape
    Lk = k.shape[2]
    return pl.pallas_call(
        _attention_kernel,
        out_shape=jax.ShapeDtypeStruct((B, nh, Lq, dh), jnp.bfloat16),
        grid=(B,),
        in_specs=[pl.BlockSpec((1, nh, Lq, dh), lambda b: (b, 0, 0, 0)),
                  pl.BlockSpec((1, nh, Lk, dh), lambda b: (b, 0, 0, 0)),
                  pl.BlockSpec((1, nh, Lk, dh), lambda b: (b, 0, 0, 0))],
        out_specs=pl.BlockSpec((1, nh, Lq, dh), lambda b: (b, 0, 0, 0)),
        compiler_params=pltpu.CompilerParams(dimension_semantics=("parallel",),
                                             vmem_limit_bytes=_VMEM_LIMIT),
    )(q, k, v)


# ----------------------------------------------------------------------------
# deterministic synthetic parameters (pre-padded, bf16 weights, f32 biases)
# ----------------------------------------------------------------------------
class ParamGen:
    def __init__(self, seed=0):
        self.rng = np.random.default_rng(seed)

    def uniform(self, shape, scale):
        a = (self.rng.random(shape, dtype=np.float32) - 0.5) * (2.0 * float(scale))
        return jnp.asarray(a)


def _finish_w(w):
    din = w.shape[0]
    kp = _padded_k(din)
    if kp > din:
        w = jnp.pad(w, ((0, kp - din), (0, 0)))
    return w.astype(jnp.bfloat16)


def make_linear(g, din, dout, bias=True):
    p = {"w": _finish_w(g.uniform((din, dout), math.sqrt(3.0 / din)))}
    p["b"] = g.uniform((1, dout), 1.0 / math.sqrt(din)).astype(jnp.float32) if bias else None
    return p


def make_conv1(g, cin, cout):
    fan = cin
    return {"w": _finish_w(g.uniform((cin, cout), math.sqrt(3.0 / fan))),
            "b": g.uniform((1, cout), 1.0 / math.sqrt(fan)).astype(jnp.float32)}


def make_conv3(g, cin, cout):
    fan = cin * 9
    w = g.uniform((3, 3, cin, cout), math.sqrt(3.0 / fan)).reshape(9, cin, cout)
    return {"w": w.astype(jnp.bfloat16),
            "b": g.uniform((1, cout), 1.0 / math.sqrt(fan)).astype(jnp.float32)}


def make_conv_down(g, cin, cout):
    fan = cin * 9
    w = g.uniform((3, 3, cin, cout), math.sqrt(3.0 / fan)).reshape(9 * cin, cout)
    return {"w": _finish_w(w),
            "b": g.uniform((1, cout), 1.0 / math.sqrt(fan)).astype(jnp.float32)}


_GROUP_MATS = {}


def _group_mats(c, groups=32):
    if c not in _GROUP_MATS:
        cg = c // groups
        idx = np.arange(c) // cg
        m = (idx[:, None] == np.arange(groups)[None, :]).astype(np.float32)
        _GROUP_MATS[c] = (jnp.asarray(m), jnp.asarray(np.ascontiguousarray(m.T)))
    return _GROUP_MATS[c]


def make_norm(c, with_groups=False):
    d = {"g": jnp.ones((1, c), jnp.float32), "b": jnp.zeros((1, c), jnp.float32)}
    if with_groups:
        m, mt = _group_mats(c)
        d["m"], d["mt"] = m, mt
    return d


def make_res(g, cin, cout, lt):
    d = {"gn1": make_norm(cin, with_groups=True),
         "conv1": make_conv3(g, cin, cout),
         "gn2": make_norm(cout, with_groups=True),
         "conv2": make_conv3(g, cout, cout),
         "cout": cout, "t_off": lt["off"]}
    # collect the per-resblock time projection so all of them run as ONE matmul per forward
    lt["ws"].append(g.uniform((1280, cout), math.sqrt(3.0 / 1280)))
    lt["bs"].append(g.uniform((1, cout), 1.0 / math.sqrt(1280)))
    lt["off"] += cout
    if cin != cout:
        d["skip"] = make_conv1(g, cin, cout)
    return d


def make_attnblock(g, n_heads, n_embed):
    c = n_heads * n_embed
    dh = n_embed
    scale = 1.0 / math.sqrt(dh)
    w_in = g.uniform((c, 3 * c), math.sqrt(3.0 / c))
    w_in = jnp.concatenate([w_in[:, :c] * scale, w_in[:, c:]], axis=1)  # fold 1/sqrt(dh) into Wq
    wgg = g.uniform((c, 8 * c), math.sqrt(3.0 / c))
    bgg = g.uniform((1, 8 * c), 1.0 / math.sqrt(c))
    return {
        "heads": n_heads,
        "gn": make_norm(c, with_groups=True),
        "conv_in": make_conv1(g, c, c),
        "ln1": make_norm(c),
        "attn1_in": _finish_w(w_in),
        "attn1_out": make_linear(g, c, c),
        "ln2": make_norm(c),
        "wq": _finish_w(g.uniform((c, c), math.sqrt(3.0 / c)) * scale),
        "wk": _finish_w(g.uniform((768, c), math.sqrt(3.0 / 768))),
        "wv": _finish_w(g.uniform((768, c), math.sqrt(3.0 / 768))),
        "attn2_out": make_linear(g, c, c),
        "ln3": make_norm(c),
        "wx": _finish_w(wgg[:, :4 * c]), "wg": _finish_w(wgg[:, 4 * c:]),
        "bx": bgg[:, :4 * c].astype(jnp.float32), "bg": bgg[:, 4 * c:].astype(jnp.float32),
        "geglu2": make_linear(g, 4 * c, c),
        "conv_out": make_conv1(g, c, c),
    }


ENC_PLAN = [
    ("conv", 4, 320),
    ("res_attn", 320, 320, 8, 40),
    ("res_attn", 320, 320, 8, 40),
    ("down", 320),
    ("res_attn", 320, 640, 8, 80),
    ("res_attn", 640, 640, 8, 80),
    ("down", 640),
    ("res_attn", 640, 1280, 8, 160),
    ("res_attn", 1280, 1280, 8, 160),
    ("down", 1280),
    ("res", 1280, 1280),
    ("res", 1280, 1280),
]
# (cin, cout, (heads, d_embed) or None, upsample)
DEC_PLAN = [
    (2560, 1280, None, False),
    (2560, 1280, None, False),
    (2560, 1280, None, True),
    (2560, 1280, (8, 160), False),
    (2560, 1280, (8, 160), False),
    (1920, 1280, (8, 160), True),
    (1920, 640, (8, 80), False),
    (1280, 640, (8, 80), False),
    (960, 640, (8, 80), True),
    (960, 320, (8, 40), False),
    (640, 320, (8, 40), False),
    (640, 320, (8, 40), False),
]


def build_params(seed=0):
    g = ParamGen(seed)
    lt = {"ws": [], "bs": [], "off": 0}
    P = {"time_l1": make_linear(g, 320, 1280), "time_l2": make_linear(g, 1280, 1280)}
    enc = []
    for spec in ENC_PLAN:
        kind = spec[0]
        if kind == "conv":
            enc.append({"conv": make_conv3(g, spec[1], spec[2])})
        elif kind == "down":
            enc.append({"conv": make_conv_down(g, spec[1], spec[1])})
        elif kind == "res":
            enc.append({"res": make_res(g, spec[1], spec[2], lt)})
        else:
            enc.append({"res": make_res(g, spec[1], spec[2], lt),
                        "attn": make_attnblock(g, spec[3], spec[4])})
    P["enc"] = enc
    P["bneck_res1"] = make_res(g, 1280, 1280, lt)
    P["bneck_attn"] = make_attnblock(g, 8, 160)
    P["bneck_res2"] = make_res(g, 1280, 1280, lt)
    dec = []
    for cin, cout, attn, up in DEC_PLAN:
        d = {"res": make_res(g, cin, cout, lt)}
        if attn is not None:
            d["attn"] = make_attnblock(g, attn[0], attn[1])
        if up:
            d["up"] = make_conv3(g, cout, cout)
        dec.append(d)
    P["dec"] = dec
    P["final_gn"] = make_norm(320, with_groups=True)
    P["final_conv"] = make_conv3(g, 320, 4)
    # batched time projections: one (1280, sum_cout) matmul replaces ~22 tiny ones
    total = lt["off"]
    total_p = _round_up(total, 256)
    w_all = jnp.concatenate(lt["ws"], axis=1)
    b_all = jnp.concatenate(lt["bs"], axis=1)
    if total_p > total:
        w_all = jnp.pad(w_all, ((0, 0), (0, total_p - total)))
        b_all = jnp.pad(b_all, ((0, 0), (0, total_p - total)))
    P["lt_w"] = w_all.astype(jnp.bfloat16)
    P["lt_b"] = b_all.astype(jnp.float32)
    return P


# ----------------------------------------------------------------------------
# forward passes (glue orchestrating the Pallas kernels)
# ----------------------------------------------------------------------------
def conv1x1(x, p):
    B, H, W, C = x.shape
    y = pallas_matmul(x.reshape(B * H * W, C), p["w"], p["b"])
    return y.reshape(B, H, W, -1)


def resblock(p, x, t_all):
    residual = x
    h = group_norm(x, p["gn1"], apply_silu=True)
    tproj = t_all[:, p["t_off"]:p["t_off"] + p["cout"]].astype(jnp.float32)   # (1, cout)
    # time projection folded into conv1's bias (== x + time.unsqueeze(-1).unsqueeze(-1))
    h = conv3x3_s1(h, p["conv1"]["w"], p["conv1"]["b"] + tproj)
    h = group_norm(h, p["gn2"], apply_silu=True)
    h = conv3x3_s1(h, p["conv2"]["w"], p["conv2"]["b"])
    if "skip" in p:
        residual = conv1x1(residual, p["skip"])
    return h + residual


def _split_heads(t, nh):          # (B, L, C) -> (B, nh, L, dh)
    B, L, C = t.shape
    return jnp.transpose(t.reshape(B, L, nh, C // nh), (0, 2, 1, 3))


def _merge_heads(t):              # (B, nh, L, dh) -> (B, L, C)
    B, nh, L, dh = t.shape
    return jnp.transpose(t, (0, 2, 1, 3)).reshape(B, L, nh * dh)


def attnblock(p, x, ctx):
    nh = p["heads"]
    B, H, W, C = x.shape
    L = H * W
    residual_long = x
    h = group_norm(x, p["gn"], apply_silu=True)
    h = conv1x1(h, p["conv_in"]).reshape(B, L, C)

    # self attention
    res = h
    hn = layer_norm(h, p["ln1"])
    qkv = pallas_matmul(hn.reshape(B * L, C), p["attn1_in"])          # no bias
    qkv = qkv.reshape(B, L, 3, nh, C // nh)
    q = jnp.transpose(qkv[:, :, 0], (0, 2, 1, 3))
    k = jnp.transpose(qkv[:, :, 1], (0, 2, 1, 3))
    v = jnp.transpose(qkv[:, :, 2], (0, 2, 1, 3))
    a = _merge_heads(pallas_attention(q, k, v))
    a = pallas_matmul(a.reshape(B * L, C),
                      p["attn1_out"]["w"], p["attn1_out"]["b"]).reshape(B, L, C)
    h = a + res

    # cross attention
    res = h
    hn = layer_norm(h, p["ln2"])
    S, Dc = ctx.shape[1], ctx.shape[2]
    q = _split_heads(pallas_matmul(hn.reshape(B * L, C), p["wq"]).reshape(B, L, C), nh)
    k = _split_heads(pallas_matmul(ctx.reshape(B * S, Dc), p["wk"]).reshape(B, S, C), nh)
    v = _split_heads(pallas_matmul(ctx.reshape(B * S, Dc), p["wv"]).reshape(B, S, C), nh)
    a = _merge_heads(pallas_attention(q, k, v))
    a = pallas_matmul(a.reshape(B * L, C),
                      p["attn2_out"]["w"], p["attn2_out"]["b"]).reshape(B, L, C)
    h = a + res

    # GEGLU feed-forward (fused)
    res = h
    hn = layer_norm(h, p["ln3"])
    hg = pallas_geglu_matmul(hn.reshape(B * L, C), p["wx"], p["wg"], p["bx"], p["bg"])
    h2 = pallas_matmul(hg, p["geglu2"]["w"], p["geglu2"]["b"]).reshape(B, L, C)
    h = h2 + res

    h = h.reshape(B, H, W, C)
    h = conv1x1(h, p["conv_out"])
    return h + residual_long


def diffusion_forward(P, latent_nchw, context, time):
    x = jnp.transpose(latent_nchw, (0, 2, 3, 1)).astype(jnp.bfloat16)     # NCHW -> NHWC
    ctx = context.astype(jnp.bfloat16)

    # TimeEmbedding: linear(320->1280) + silu (fused) + linear(1280->1280)
    temb = pallas_matmul(time.astype(jnp.bfloat16), P["time_l1"]["w"], P["time_l1"]["b"],
                         act="silu")
    temb = pallas_matmul(temb, P["time_l2"]["w"], P["time_l2"]["b"])      # (1, 1280) bf16
    # all per-resblock silu+linear time projections in ONE matmul
    t_in = jax.nn.silu(temb.astype(jnp.float32)).astype(jnp.bfloat16)
    t_all = pallas_matmul(t_in, P["lt_w"], P["lt_b"])                      # (1, sum_cout)

    skips = []
    for spec, p in zip(ENC_PLAN, P["enc"]):
        kind = spec[0]
        if kind == "conv":
            x = conv3x3_s1(x, p["conv"]["w"], p["conv"]["b"])
        elif kind == "down":
            x = conv3x3_down(x, p["conv"]["w"], p["conv"]["b"])
        else:
            x = resblock(p["res"], x, t_all)
            if kind == "res_attn":
                x = attnblock(p["attn"], x, ctx)
        skips.append(x)

    x = resblock(P["bneck_res1"], x, t_all)
    x = attnblock(P["bneck_attn"], x, ctx)
    x = resblock(P["bneck_res2"], x, t_all)

    for (cin, cout, attn, up), p in zip(DEC_PLAN, P["dec"]):
        x = jnp.concatenate([x, skips.pop()], axis=-1)                     # channel concat
        x = resblock(p["res"], x, t_all)
        if attn is not None:
            x = attnblock(p["attn"], x, ctx)
        if up:
            # TODO(synk): fuse the nearest x2 upsample into the following conv's input indexing.
            x = jnp.repeat(jnp.repeat(x, 2, axis=1), 2, axis=2)
            x = conv3x3_s1(x, p["up"]["w"], p["up"]["b"])

    # UNET_OutputLayer: GroupNorm + SiLU + conv3x3(320 -> 4)
    x = group_norm(x, P["final_gn"], apply_silu=True)
    x = conv3x3_s1(x, P["final_conv"]["w"], P["final_conv"]["b"])
    return jnp.transpose(x, (0, 3, 1, 2)).astype(jnp.float32)             # NHWC -> NCHW


# ----------------------------------------------------------------------------
if __name__ == "__main__":
    key = jax.random.PRNGKey(0)
    k1, k2, k3 = jax.random.split(key, 3)
    latent = jax.random.normal(k1, (2, 4, 16, 16), jnp.float32)    # (B, 4, H, W)
    context = jax.random.normal(k2, (2, 8, 768), jnp.float32)      # (B, seq, d_context)
    time_vec = jax.random.normal(k3, (1, 320), jnp.float32)        # (1, 320)

    params = build_params(seed=0)
    out = diffusion_forward(params, latent, context, time_vec)
    out = jax.block_until_ready(out)
    assert out.shape == (2, 4, 16, 16), out.shape
    print("KERNEL_OK")
</pallas_src>

<mosaic_0001>
module attributes {stable_mosaic.version = 11 : i64} {
  func.func @_matmul_kernel(%arg0: i32, %arg1: i32, %arg2: i32, %arg3: memref<8x320xbf16, #tpu.memory_space<vmem>>, %arg4: memref<320x256xbf16, #tpu.memory_space<vmem>>, %arg5: memref<1x256xf32, #tpu.memory_space<vmem>>, %arg6: memref<8x256xbf16, #tpu.memory_space<vmem>>, %arg7: memref<8x256xf32, #tpu.memory_space<vmem>>) attributes {dimension_semantics = [#tpu.dimension_semantics<parallel>, #tpu.dimension_semantics<parallel>, #tpu.dimension_semantics<arbitrary>], iteration_bounds = array<i64: 1, 5, 1>, scalar_prefetch = 0 : i64, scratch_operands = 1 : i64, tpu.core_type = #tpu.core_type<tc>, window_params = [{transform_indices = @transform_0, window_bounds = array<i64: 8, 320>}, {transform_indices = @transform_1, window_bounds = array<i64: 320, 256>}, {transform_indices = @transform_2, window_bounds = array<i64: 1, 256>}, {transform_indices = @transform_3, window_bounds = array<i64: 8, 256>}]} {
    %c0_i32 = arith.constant 0 : i32
    %0 = arith.cmpi eq, %arg2, %c0_i32 : i32
    %1 = arith.extui %0 : i1 to i32
    %c0_i32_0 = arith.constant 0 : i32
    %2 = arith.cmpi ne, %1, %c0_i32_0 : i32
    scf.if %2 {
      %cst_10 = arith.constant 0.000000e+00 : f32
      %12 = vector.broadcast %cst_10 : f32 to vector<8x256xf32>
      %c0_11 = arith.constant 0 : index
      %c0_12 = arith.constant 0 : index
      %13 = vector.load %arg7[%c0_11, %c0_12] : memref<8x256xf32, #tpu.memory_space<vmem>>, vector<8x256xf32>
      tpu.vector_store %arg7[%c0_11, %c0_12], %12 {strides = array<i32>} : memref<8x256xf32, #tpu.memory_space<vmem>>, vector<8x256xf32>,
    } else {
    }
    %c0 = arith.constant 0 : index
    %c0_1 = arith.constant 0 : index
    %3 = vector.load %arg7[%c0, %c0_1] : memref<8x256xf32, #tpu.memory_space<vmem>>, vector<8x256xf32>
    %c0_2 = arith.constant 0 : index
    %c0_3 = arith.constant 0 : index
    %4 = vector.load %arg3[%c0_2, %c0_3] : memref<8x320xbf16, #tpu.memory_space<vmem>>, vector<8x320xbf16>
    %c0_4 = arith.constant 0 : index
    %c0_5 = arith.constant 0 : index
    %5 = vector.load %arg4[%c0_4, %c0_5] : memref<320x256xbf16, #tpu.memory_space<vmem>>, vector<320x256xbf16>
    %cst = arith.constant dense<0.000000e+00> : vector<8x256xf32>
    %6 = tpu.matmul %4, %5, %cst {dimension_numbers = #tpu.dot_dimension_numbers<[1], [0], [0], [1], [0, 0, 1, 1], [], []>} : vector<8x320xbf16>, vector<320x256xbf16>, vector<8x256xf32> -> vector<8x256xf32>
    %7 = arith.addf %3, %6 : vector<8x256xf32>
    %c0_6 = arith.constant 0 : index
    %c0_7 = arith.constant 0 : index
    %8 = vector.load %arg7[%c0_6, %c0_7] : memref<8x256xf32, #tpu.memory_space<vmem>>, vector<8x256xf32>
    tpu.vector_store %arg7[%c0_6, %c0_7], %7 {strides = array<i32>} : memref<8x256xf32, #tpu.memory_space<vmem>>, vector<8x256xf32>,
    %c0_i32_8 = arith.constant 0 : i32
    %9 = arith.cmpi eq, %arg2, %c0_i32_8 : i32
    %10 = arith.extui %9 : i1 to i32
    %c0_i32_9 = arith.constant 0 : i32
    %11 = arith.cmpi ne, %10, %c0_i32_9 : i32
    scf.if %11 {
      %c0_10 = arith.constant 0 : index
      %c0_11 = arith.constant 0 : index
      %12 = vector.load %arg7[%c0_10, %c0_11] : memref<8x256xf32, #tpu.memory_space<vmem>>, vector<8x256xf32>
      %c0_12 = arith.constant 0 : index
      %c0_13 = arith.constant 0 : index
      %13 = vector.load %arg5[%c0_12, %c0_13] : memref<1x256xf32, #tpu.memory_space<vmem>>, vector<1x256xf32>
      %14 = vector.broadcast %13 : vector<1x256xf32> to vector<8x256xf32>
      %15 = arith.addf %12, %14 : vector<8x256xf32>
      %16 = arith.negf %15 : vector<8x256xf32>
      %17 = math.exp %16 : vector<8x256xf32>
      %cst_14 = arith.constant 1.000000e+00 : f32
      %18 = vector.broadcast %cst_14 : f32 to vector<8x256xf32>
      %19 = arith.addf %18, %17 : vector<8x256xf32>
      %20 = arith.divf %18, %19 : vector<8x256xf32>
      %21 = arith.mulf %15, %20 : vector<8x256xf32>
      %22 = arith.truncf %21 : vector<8x256xf32> to vector<8x256xbf16>
      %c0_15 = arith.constant 0 : index
      %c0_16 = arith.constant 0 : index
      %23 = vector.load %arg6[%c0_15, %c0_16] : memref<8x256xbf16, #tpu.memory_space<vmem>>, vector<8x256xbf16>
      tpu.vector_store %arg6[%c0_15, %c0_16], %22 {strides = array<i32>} : memref<8x256xbf16, #tpu.memory_space<vmem>>, vector<8x256xbf16>,
    } else {
    }
    return
  }
  func.func @transform_0(%arg0: i32, %arg1: i32, %arg2: i32) -> (i32, i32) {
    %c0_i32 = arith.constant 0 : i32
    return %arg0, %arg2 : i32, i32
  }
  func.func @transform_1(%arg0: i32, %arg1: i32, %arg2: i32) -> (i32, i32) {
    %c0_i32 = arith.constant 0 : i32
    return %arg2, %arg1 : i32, i32
  }
  func.func @transform_2(%arg0: i32, %arg1: i32, %arg2: i32) -> (i32, i32) {
    %c0_i32 = arith.constant 0 : i32
    %c0_i32_0 = arith.constant 0 : i32
    return %c0_i32, %arg1 : i32, i32
  }
  func.func @transform_3(%arg0: i32, %arg1: i32, %arg2: i32) -> (i32, i32) {
    %c0_i32 = arith.constant 0 : i32
    return %arg0, %arg1 : i32, i32
  }
}

</mosaic_0001>

<bundles_post_ra>
// kernel: pallas_matmul.1
= control target key start
LH: loop header
LB: loop body
LE: loop exit
PB: predicated region body
PF: predicated region fallthrough
CT: control target
= control target key end

     0   :  { %8 = vsyncpa [#allocation4], 0  ;;  %s1249_s0 = inlined_call_operand.vmem [shape: bf16[8,320], index: 0, kind: input, shape index: {}]   ;;  %s1250_s1 = inlined_call_operand.hbm [shape: bf16[320,1280], index: 1, kind: input, shape index: {}]   ;;  %s1251_s2 = inlined_call_operand.vmem [shape: f32[1,1280], index: 2, kind: input, shape index: {}]   ;;  %s1252_s3 = inlined_call_operand.vmem [shape: bf16[8,1280], index: 3, kind: output, shape index: {}]  }
   0x1   :  { %10 = vsyncpa [#allocation4 + $0x1], 0  ;;  %s1103_s12 = smov 0   ;;  %s1105_s13 = smov 0  }
   0x2   :  { %s1107_s14 = smov 0   ;;  %s1109_s15 = smov 0  }
   0x3   :  { %s1111_s16 = smov 0   ;;  %s1113_s17 = smov 0  }
   0x4 LB: > { %s804_s18 = sadd.s32 4294967295, %s1076_s17   ;;  %s31_s19 = sadd.s32 1, %s1072_s16  ;;  %s1076_s17 = sphi %s1113_s17, %s16_s17   ;;  %s1072_s16 = sphi %s1111_s16, %s1259_s16   ;;  %s1068_s15 = sphi %s1109_s15, %s1258_s15   ;;  %s1064_s14 = sphi %s1107_s14, %s1257_s14   ;;  %s1060_s13 = sphi %s1105_s13, %s1256_s13   ;;  %s1056_s12 = sphi %s1103_s12, %s1255_s12  }
   0x5   : > { %p33_p0 = scmp.ge.s32.totalorder %s31_s19, 5  ;;  %s72_s20 = sadd.s32 1, %s1064_s14 }
   0x6   : > { %p79_p1 = scmp.ne.s32.totalorder %s1064_s14, %s1060_s13  ;;  %p80_p2 = scmp.eq.s32.totalorder %s1076_s17, 0 }
   0x7   : > { %s1261_s19 = smov (%p33_p0, %s31_s19), 0  ;;  %p85_p4 = scmp.ne.s32.totalorder %s1060_s13, %s1056_s12 }
   0x8   : > { %p81_p3 = por %p80_p2, %p79_p1  ;;  %s68_s21 = ssub.s32 %s1072_s16, %s1261_s19 }
   0x9   : > { %p86_p5 = scmp.eq.s32.totalorder %s804_s18, 0  ;;  %p70_p6 = scmp.eq.s32.totalorder %s68_s21, 0 }
   0xa   : > { %p874_p8 = scmp.lt.s32.totalorder %s1076_s17, 5  ;;  %s176_s24 = sand.u32 1, %s1064_s14  }
   0xb   : > { %p1142_p7 = por %p86_p5, %p85_p4  ;;  %s864_s25 = sshll.u32 %s1072_s16, 7 }
   0xc   : > { %s1148_s23 = scalar_select %p70_p6, %s1064_s14, %s72_s20  }
   0xd   : > { %s866_s26 = smul.u32 320, %s176_s24  ;;  %s189_s29 = scalar_lea.hbm %s1250_s1, %s864_s25 }
   0xe   : > { %p1155_p9 = pnand %p874_p8, %p81_p3  ;;  %p811_p10 = scmp.ge.s32.totalorder %s1076_s17, 1 }
   0xf   : > { %s180_s4 = scalar_lea.vmem [#allocation3], %s866_s26  ;;  %s177_s6 = scalar_lea.sflag [#allocation4], %s176_s24 }
  0x10   : > { %s190_s5 = sshll.u32 %s180_s4, 4  ;;  %p1000_p11 = pneg %p1155_p9  ;;  %s191_s5 = int_to_ptr.vmem [resolvable:$true] %s190_s5 }
  0x11   : > { %s1011_s7 = scalar_lea.vmem %s191_s5, 5120  ;;  %s1078_s8 = smov [#allocation3]  }
  0x12   : > { %p1012_p12 = scmp.ne.s32.totalorder %s191_s5, %s1011_s7  ;;  %s1016_s9 = sshll.u32 %s1078_s8, 4  ;;  %s1017_s9 = int_to_ptr.vmem [resolvable:$false] %s1016_s9 }
  0x13   : > { %s1018_s10 = scalar_lea.vmem %s1017_s9, 10240  ;;  %p1019_p1 = scmp.lt.s32.totalorder %s191_s5, %s1017_s9 }
  0x14   : > { %p1014_p13 = pnand %p1012_p12, %p1000_p11  ;;  %p1020_p2 = scmp.lt.s32.totalorder %s1018_s10, %s1011_s7 }
  0x16   : > { %p1015_p0 = pneg %p1014_p13  ;;  %p1021_p3 = por %p1020_p2, %p1019_p1 }
  0x18   : > { %p1022_p4 = pnand %p1021_p3, %p1015_p0 }
  0x1a   : > { %1025 = shalt.err (!%p1022_p4)
}
  0x1b   : > { %s1079_s11 = smov 640   ;;  %s1080_s12 = smov 128  }
  0x1c   : > { %s1081_s18 = smov 8   ;;  %p206_p5 = scmp.lt.s32.totalorder %s1076_s17, 6 }
  0x1d   : > { %873 = dma.hbm_to_vmem [thread:$0]  (!%p1155_p9), %s189_s29, 5120, %s191_s5, %s177_s6, %s1079_s11, %s1080_s12, %s1081_s18  }
  0x1e   : > { %p207_p6 = pnand %p811_p10, %p206_p5 }
  0x1f   : > { %s212_s20 = sand.u32 (!%p207_p6), 1, %s1060_s13  }
  0x20   : > { %210 = sbr.rel (%p207_p6) target bundleno = 339 (0x153), region = 32  ;;  %s213_s24 = scalar_lea.sflag (!%p207_p6), [#allocation4], %s212_s20 }
  0x21   : > { %s867_s21 = smul.u32 (!%p207_p6), 320, %s212_s20 }
  0x23   : > { %s1168_s25 = scalar_lea.vmem (!%p207_p6), [#allocation3], %s867_s21 }
  0x25   : > { %1051 = dma.done.wait (%p1142_p7), %s213_s24, 5120  }
  0x26   : > { %1053 = vsyncadd (%p1142_p7), %s213_s24, 4294962176  ;;  %v1082_v0 = vmov 0   ;;  %v927_v1 = vld [vmem:[%s1168_s25 + $0x74] ss:$8 sps:$4 sm:$0xff]   ;;  %v929_v2 = vld [vmem:[%s1168_s25 + $0x70] ss:$8 sps:$4 sm:$0xff]   ;;  %v641_v49 = vlaneseq }
  0x27   : > { %621 = vmatprep.mubr.bf16.mxu1 %v1082_v0  ;;  %548 = vmatprep.subr.bf16.mxu0 %v927_v1  ;;  %v930_v3 = vld [vmem:[%s1168_s25 + $0x64] ss:$8 sps:$4 sm:$0xff]   ;;  %v932_v4 = vld [vmem:[%s1168_s25 + $0x60] ss:$8 sps:$4 sm:$0xff]   ;;  %v933_v5 = vld [vmem:[%s1168_s25 + $0x54] ss:$8 sps:$4 sm:$0xff]  }
  0x28   : > { %549 = vmatpush1.bf16.msra.mxu0 %v929_v2  ;;  %v935_v6 = vld [vmem:[%s1168_s25 + $0x50] ss:$8 sps:$4 sm:$0xff]   ;;  %v936_v7 = vld [vmem:[%s1168_s25 + $0x44] ss:$8 sps:$4 sm:$0xff]   ;;  %v938_v8 = vld [vmem:[%s1168_s25 + $0x40] ss:$8 sps:$4 sm:$0xff]  }
  0x29   : > { %550 = vmatprep.subr.bf16.mxu0 %v930_v3  ;;  %v939_v9 = vld [vmem:[%s1168_s25 + $0x34] ss:$8 sps:$4 sm:$0xff]   ;;  %v941_v10 = vld [vmem:[%s1168_s25 + $0x30] ss:$8 sps:$4 sm:$0xff]   ;;  %v942_v13 = vld [vmem:[%s1168_s25 + $0x24] ss:$8 sps:$4 sm:$0xff]  }
  0x2a   : > { %v960_v11 = vld [vmem:[%s1168_s25 + $0x134] ss:$8 sps:$4 sm:$0xff]   ;;  %v962_v12 = vld [vmem:[%s1168_s25 + $0x130] ss:$8 sps:$4 sm:$0xff]   ;;  %v966_v14 = vld [vmem:[%s1168_s25 + $0x124] ss:$8 sps:$4 sm:$0xff]  }
  0x2b   : > { %597 = vmatprep.subr.bf16.mxu1 %v960_v11  ;;  %v968_v15 = vld [vmem:[%s1168_s25 + $0x120] ss:$8 sps:$4 sm:$0xff]   ;;  %v945_v17 = vld [vmem:[%s1168_s25 + $0x14] ss:$8 sps:$4 sm:$0xff]   ;;  %v974_v19 = vld [vmem:[%s1168_s25 + $0x110] ss:$8 sps:$4 sm:$0xff]  }
  0x2c   : > { %551 = vmatpush1.bf16.msra.mxu0 %v932_v4  ;;  %598 = vmatpush1.bf16.msra.mxu1 %v962_v12  ;;  %v944_v16 = vld [vmem:[%s1168_s25 + $0x20] ss:$8 sps:$4 sm:$0xff]   ;;  %v972_v18 = vld [vmem:[%s1168_s25 + $0x114] ss:$8 sps:$4 sm:$0xff]   ;;  %v947_v20 = vld [vmem:[%s1168_s25 + $0x10] ss:$8 sps:$4 sm:$0xff]  }
  0x2d   : > { %552 = vmatprep.subr.bf16.mxu0 %v933_v5  ;;  %599 = vmatprep.subr.bf16.mxu1 %v966_v14  ;;  %v978_v21 = vld [vmem:[%s1168_s25 + $0x104] ss:$8 sps:$4 sm:$0xff]   ;;  %v980_v23 = vld [vmem:[%s1168_s25 + $0x100] ss:$8 sps:$4 sm:$0xff]   ;;  %v951_v26 = vld [vmem:[%s1168_s25 + $0xf4] ss:$8 sps:$4 sm:$0xff]  }
  0x2e   : > { %v948_v22 = vld [vmem:[%s1168_s25 + $0x4] ss:$8 sps:$4 sm:$0xff]   ;;  %v950_v24 = vld [vmem:[%s1168_s25] ss:$8 sps:$4 sm:$0xff]   ;;  %vm544_vm0 = vcmask 523264   ;;  %s812_s29 = sshll.u32 %s1068_s15, 1 }
  0x2f   : > { %v292_v25 = vld [vmem:[%s1249_s0] sm:$0xff]  ;;  %v984_v28 = vld [vmem:[%s1249_s0 + $0x8] ss:$0 sps:$4 sm:$0xff]   ;;  %v953_v29 = vld [vmem:[%s1168_s25 + $0xf0] ss:$8 sps:$4 sm:$0xff]   ;;  %p269_p7 = scmp.lt.s32.totalorder %s812_s29, 9 }
  0x30   : > { %553 = vmatpush1.bf16.msra.mxu0 %v935_v6  ;;  %600 = vmatpush1.bf16.msra.mxu1 %v968_v15  ;;  %v816_v27 = vcombine.high %v292_v25, %v292_v25  ;;  %v954_v30 = vld [vmem:[%s1168_s25 + $0xe4] ss:$8 sps:$4 sm:$0xff]   ;;  %v956_v31 = vld [vmem:[%s1168_s25 + $0xe0] ss:$8 sps:$4 sm:$0xff]   ;;  %v957_v32 = vld [vmem:[%s1168_s25 + $0xd4] ss:$8 sps:$4 sm:$0xff]   ;;  %v815_v44 = vcombine.low %v292_v25, %v292_v25 }
  0x31   : > { %554 = vmatprep.subr.bf16.mxu0 %v936_v7  ;;  %601 = vmatprep.subr.bf16.mxu1 %v972_v18  ;;  %v959_v33 = vld [vmem:[%s1168_s25 + $0xd0] ss:$8 sps:$4 sm:$0xff]   ;;  %v963_v34 = vld [vmem:[%s1168_s25 + $0xc4] ss:$8 sps:$4 sm:$0xff]   ;;  %v965_v35 = vld [vmem:[%s1168_s25 + $0xc0] ss:$8 sps:$4 sm:$0xff]  }
  0x32   : > { %580 = vmatprep.mubr.bf16.mxu0 %v816_v27  ;;  %v969_v36 = vld [vmem:[%s1168_s25 + $0xb4] ss:$8 sps:$4 sm:$0xff]   ;;  %v971_v37 = vld [vmem:[%s1168_s25 + $0xb0] ss:$8 sps:$4 sm:$0xff]   ;;  %v975_v38 = vld [vmem:[%s1168_s25 + $0xa4] ss:$8 sps:$4 sm:$0xff]  }
  0x33   : > { %v977_v39 = vld [vmem:[%s1168_s25 + $0xa0] ss:$8 sps:$4 sm:$0xff]   ;;  %v981_v40 = vld [vmem:[%s1168_s25 + $0x94] ss:$8 sps:$4 sm:$0xff]   ;;  %v983_v41 = vld [vmem:[%s1168_s25 + $0x90] ss:$8 sps:$4 sm:$0xff]  }
  0x34   : > { %555 = vmatpush1.bf16.msra.mxu0 %v938_v8  ;;  %602 = vmatpush1.bf16.msra.mxu1 %v974_v19  ;;  %v985_v42 = vld [vmem:[%s1168_s25 + $0x84] ss:$8 sps:$4 sm:$0xff]   ;;  %v987_v43 = vld [vmem:[%s1168_s25 + $0x80] ss:$8 sps:$4 sm:$0xff]   ;;  %s1263_s29 = smov (!%p269_p7, %s812_s29), 9  ;;  %v642_v50 = vshrl.u32 %v641_v49, 7 }
  0x35   : > { %556 = vmatprep.subr.bf16.mxu0 %v939_v9  ;;  %603 = vmatprep.subr.bf16.mxu1 %v978_v21  ;;  %s271_s5 = scalar_lea.vmem %s1251_s2, %s1263_s29  ;;  %s814_s15 = sshll.u32 %s1263_s29, 2 }
  0x36   : > { %v643_v51 = vsub.s32 0, %v642_v50  ;;  %v639_v52 = vld [vmem:[%s271_s5] sm:$0x3]  ;;  %v647_v53 = vsub.s32 1, %v642_v50  ;;  %s281_s8 = scalar_lea.vmem %s1252_s3, %s814_s15 }
  0x38   : > { %557 = vmatpush1.bf16.msra.mxu0 %v941_v10  ;;  %604 = vmatpush1.bf16.msra.mxu1 %v980_v23  ;;  %v644_v54 = vrot.slane %v639_v52, %v643_v51  ;;  %v648_v57 = vrot.slane %v639_v52, %v647_v53 }
  0x39   : > { %558 = vmatprep.subr.bf16.mxu0 %v942_v13 }
  0x3b   : > { %858 = vmatmul.mubr.msk.bf16.vlgmr.msra.gmra.mxu1 %vm544_vm0, %v984_v28 }
  0x3c   : > { %559 = vmatpush1.bf16.msra.mxu0 %v944_v16 }
  0x3d   : > { %560 = vmatprep.subr.bf16.mxu0 %v945_v17 }
  0x40   : > { %561 = vmatpush1.bf16.msra.mxu0 %v947_v20 }
  0x41   : > { %562 = vmatprep.subr.bf16.mxu0 %v948_v22 }
  0x44   : > { %563 = vmatpush1.bf16.msra.mxu0 %v950_v24 }
  0x45   : > { %564 = vmatprep.subr.bf16.mxu0 %v951_v26 }
  0x48   : > { %565 = vmatpush2.bf16.msra.mxu0 %v953_v29 }
  0x49   : > { %566 = vmatprep.subr.bf16.mxu0 %v954_v30 }
  0x4c   : > { %567 = vmatpush2.bf16.msra.mxu0 %v956_v31 }
  0x4d   : > { %568 = vmatprep.subr.bf16.mxu0 %v957_v32 }
  0x50   : > { %569 = vmatpush2.bf16.msra.mxu0 %v959_v33 }
  0x51   : > { %570 = vmatprep.subr.bf16.mxu0 %v963_v34 }
  0x54   : > { %571 = vmatpush2.bf16.msra.mxu0 %v965_v35 }
  0x55   : > { %572 = vmatprep.subr.bf16.mxu0 %v969_v36 }
  0x58   : > { %573 = vmatpush2.bf16.msra.mxu0 %v971_v37 }
  0x59   : > { %574 = vmatprep.subr.bf16.mxu0 %v975_v38 }
  0x5c   : > { %575 = vmatpush2.bf16.msra.mxu0 %v977_v39 }
  0x5d   : > { %576 = vmatprep.subr.bf16.mxu0 %v981_v40 }
  0x60   : > { %577 = vmatpush2.bf16.msra.mxu0 %v983_v41 }
  0x61   : > { %578 = vmatprep.subr.bf16.mxu0 %v985_v42 }
  0x64   : > { %579 = vmatpush2.bf16.msra.mxu0 %v987_v43 }
  0x67   : > { %581 = vmatmul.mubr.bf16.vlgmr.msra.gmra.mxu0 %v815_v44 }
  0xfb   : > { %v623_v45 = vpop.f32.mrf.mxu1 }
  0xfd   : > { %v625_v46 = vpop.f32.mrf.mxu1 }
  0xff   : > { %v627_v47 = vpop.f32.mrf.mxu1 }
 0x101   : > { %v628_v48 = vpop.f32.mrf.mxu1 }
 0x127   : > { %v582_v55 = vpop.f32.mrf.mxu0 }
 0x128   : > { %v624_v56 = vadd.f32 %v623_v45, %v582_v55 }
 0x129   : > { %v584_v58 = vpop.f32.mrf.mxu0 }
 0x12a   : > { %v651_v59 = vadd.f32 %v644_v54, %v624_v56  ;;  %v626_v60 = vadd.f32 %v625_v46, %v584_v58 }
 0x12b   : > { %v586_v61 = vpop.f32.mrf.mxu0 }
 0x12c   : > { %v859_v62 = vmul.f32 -1.442695, %v651_v59  ;;  %v652_v63 = vadd.f32 %v648_v57, %v626_v60 }
 0x12d   : > { %v587_v0 = vpop.f32.mrf.mxu0 }
 0x12e   : > { %990 = vpow2.f32 %v859_v62  ;;  %v860_v1 = vmul.f32 -1.442695, %v652_v63 }
 0x130   : > { %992 = vpow2.f32 %v860_v1 }
 0x13b   : > { %v991_v2 = vpop.eup %990 }
 0x13c   : > { %v659_v3 = vadd.f32 1.0, %v991_v2 }
 0x13d   : > { %v993_v4 = vpop.eup %992 }
 0x13e   : > { %994 = vrcp.f32 %v659_v3  ;;  %v660_v5 = vadd.f32 1.0, %v993_v4 }
 0x140   : > { %996 = vrcp.f32 %v660_v5 }
 0x14b   : > { %v995_v6 = vpop.eup %994 }
 0x14c   : > { %v665_v8 = vmul.f32 %v995_v6, %v651_v59 }
 0x14d   : > { %v997_v7 = vpop.eup %996 }
 0x14e   : > { %v666_v9 = vmul.f32 %v997_v7, %v652_v63 }
 0x150   : > { %v865_v10 = vpack.c.bf16 %v666_v9, %v665_v8 }
 0x152   : > { %675 = vst [vmem:[%s281_s8] sm:$0xff] %v865_v10 }
 0x153 PF: > { %s16_s17 = sadd.s32 1, %s1076_s17   ;;  %s1255_s12 = smov %s1060_s13 }
 0x154   : > { %p13_p8 = scmp.ge.s32.totalorder %s16_s17, 7   ;;  %s1256_s13 = smov %s1064_s14 }
 0x155   : > { %s1257_s14 = smov %s1148_s23  ;;  %s1258_s15 = smov %s1072_s16 }
 0x156   : > { %s1259_s16 = smov %s1261_s19  ;;  %15 = sbr.rel (!%p13_p8) target bundleno = 4 (0x4), region = 86 }
 0x15b   :  { %706 = vsyncpa [#allocation4], 1 }
 0x15c   :  { %708 = vsyncpa [#allocation4 + $0x1], 1 }

</bundles_post_ra>
